<compile_context>
chip_gen: v7x
topology: tpu7x:2x2x1
jax: 0.10.0
libtpu: 0.0.40
codegen_flags: <defaults>
</compile_context>

<pallas_src>
import jax
import jax.numpy as jnp
from jax.experimental import pallas as pl
from jax.experimental.pallas import tpu as pltpu

# Rating-range constants (in the original script these come from the MovieLens
# CSV: train_data['rating'] in [1, 5]).
MAX_RATING = 5.0
MIN_RATING = 1.0
_SCALE = MAX_RATING - MIN_RATING + 1.0   # logits * (max - min + 1)
_OFFSET = MIN_RATING - 1.0               # ... + min - 1


def _round_up(x, m):
    return ((x + m - 1) // m) * m


def _ncf_kernel(u_ref, m_ref,
                w1u_ref, w1m_ref, b1_ref,
                w2_ref, b2_ref,
                w3_ref, b3_ref,
                wh_ref, wg_ref, bo_ref,
                o_ref):
    """Fused NCF forward for one batch tile, feature-major layout.

    u_ref/m_ref: (F, bt) bf16, F = padded 2*embed, rows [0:E)=mlp emb, [E:2E)=mf emb.
    Output o_ref: (1, bt) f32 rescaled logits (lane-dense row).
    """
    # Upcast once; all VPU work stays f32 (v5e has no bf16 VPU/EUP).
    u = u_ref[...].astype(jnp.float32)     # (F, bt)
    m = m_ref[...].astype(jnp.float32)     # (F, bt)

    # Layer 1: concat([u_mlp, m_mlp]) @ W1 folded into two matmuls against
    # zero-padded transposed weight halves -> no concat/relayout in-kernel.
    h = (jnp.dot(w1u_ref[...], u, preferred_element_type=jnp.float32)
         + jnp.dot(w1m_ref[...], m, preferred_element_type=jnp.float32)
         + b1_ref[...])
    h = jnp.maximum(h, 0.0)                                               # (32, bt)
    h = jnp.maximum(
        jnp.dot(w2_ref[...], h, preferred_element_type=jnp.float32) + b2_ref[...], 0.0)  # (16, bt)
    h = jnp.maximum(
        jnp.dot(w3_ref[...], h, preferred_element_type=jnp.float32) + b3_ref[...], 0.0)  # (8, bt)

    # GMF branch: only rows [E:2E) carry the mf product; the mlp/padding rows
    # are masked out by zero rows in wg.
    g = u * m                                                             # (F, bt)

    # Affine head + rating rescale (scale/offset pre-folded into wh/wg/bo).
    o_ref[...] = (jnp.dot(wh_ref[...], h, preferred_element_type=jnp.float32)
                  + jnp.dot(wg_ref[...], g, preferred_element_type=jnp.float32)
                  + bo_ref[...])                                          # (1, bt)


def prepare_inference_params(params, emb_dtype=jnp.bfloat16):
    """One-time repack of the PyTorch-style params for the fused kernel."""
    f32 = jnp.float32
    e = params["user_emb_mlp"].shape[1]
    feat = 2 * e
    feat_pad = _round_up(feat, 16)   # bf16 sublane-pack alignment; extra rows are zero

    def pack_table(mlp_tab, mf_tab):
        tab = jnp.concatenate([mlp_tab, mf_tab], axis=1).astype(f32)      # (N, 2e)
        tab = jnp.pad(tab, ((0, 0), (0, feat_pad - feat)))
        return tab.T.astype(emb_dtype)                                    # (feat_pad, N)

    w1 = params["w1"].astype(f32)                                         # (2e, 32)

    def pad_w1_half(w_half):                                              # (e, 32)
        return jnp.pad(w_half.T, ((0, 0), (0, feat_pad - e)))             # (32, feat_pad)

    wa = params["wa"].astype(f32)                                         # (8 + e, 1)
    wh_t = (_SCALE * wa[:8]).T                                            # (1, 8)
    wg_t = jnp.pad((_SCALE * wa[8:]).T, ((0, 0), (e, feat_pad - 2 * e)))  # (1, feat_pad)
    bo = (_SCALE * params["ba"].astype(f32) + _OFFSET).reshape(1, 1)

    return dict(
        user_tab_t=pack_table(params["user_emb_mlp"], params["user_emb_mf"]),
        movie_tab_t=pack_table(params["movie_emb_mlp"], params["movie_emb_mf"]),
        w1u_t=pad_w1_half(w1[:e]),
        w1m_t=pad_w1_half(w1[e:]),
        b1_c=params["b1"].astype(f32).reshape(-1, 1),
        w2_t=params["w2"].astype(f32).T,
        b2_c=params["b2"].astype(f32).reshape(-1, 1),
        w3_t=params["w3"].astype(f32).T,
        b3_c=params["b3"].astype(f32).reshape(-1, 1),
        wh_t=wh_t, wg_t=wg_t, bo=bo,
    )


def neural_cf_forward(user_indices, movie_indices, prep, *, batch_tile=4096):
    """Pallas equivalent of NeuralCF.forward(user_indices, movie_indices) -> (B,) f32."""
    assert user_indices.shape == movie_indices.shape
    (batch,) = user_indices.shape
    feat_pad = prep["user_tab_t"].shape[0]

    # Batch tile: multiple of 128 lanes (lane-dense layout), capped so the grid
    # has >= 2 steps whenever batch allows it (v7x megacore / pipelining), and
    # large enough to amortize the ~0.35us/step pipeline overhead.
    half_dn = max(128, ((batch + 1) // 2) // 128 * 128)
    bt = min(_round_up(batch_tile, 128), half_dn)
    b_pad = _round_up(batch, bt)

    # Pad only the tiny int32 index vectors; padded rows gather entry 0 and are
    # sliced off at the end.
    if b_pad != batch:
        user_indices = jnp.pad(user_indices, (0, b_pad - batch))
        movie_indices = jnp.pad(movie_indices, (0, b_pad - batch))

    # TODO(synk): data-dependent embedding gather stays in XLA; its HBM cost is
    # reduced via bf16 combined transposed tables feeding the kernel directly.
    u = jnp.take(prep["user_tab_t"], user_indices, axis=1)    # (feat_pad, b_pad) bf16
    m = jnp.take(prep["movie_tab_t"], movie_indices, axis=1)  # (feat_pad, b_pad) bf16

    grid = (b_pad // bt,)

    def stream_spec():
        return pl.BlockSpec((feat_pad, bt), lambda i: (0, i))

    def full_spec(arr):
        return pl.BlockSpec(arr.shape, lambda i: (0,) * arr.ndim)

    weights = (prep["w1u_t"], prep["w1m_t"], prep["b1_c"],
               prep["w2_t"], prep["b2_c"],
               prep["w3_t"], prep["b3_c"],
               prep["wh_t"], prep["wg_t"], prep["bo"])

    out = pl.pallas_call(
        _ncf_kernel,
        out_shape=jax.ShapeDtypeStruct((1, b_pad), jnp.float32),
        grid_spec=pltpu.PrefetchScalarGridSpec(
            num_scalar_prefetch=0,
            grid=grid,
            in_specs=[stream_spec(), stream_spec()] + [full_spec(w) for w in weights],
            out_specs=pl.BlockSpec((1, bt), lambda i: (0, i)),
        ),
        compiler_params=pltpu.CompilerParams(
            # Batch tiles are independent -> megacore-shardable on v7x.
            dimension_semantics=("parallel",),
        ),
    )(u, m, *weights)

    return out[0, :batch]


def init_params(key, num_users, num_movies, embed):
    ks = jax.random.split(key, 12)

    def emb(k, n):
        return jax.random.normal(k, (n, embed), jnp.float32) * 0.1

    def lin(kw, kb, fin, fout):
        s = 1.0 / (fin ** 0.5)
        w = jax.random.uniform(kw, (fin, fout), jnp.float32, -s, s)
        b = jax.random.uniform(kb, (fout,), jnp.float32, -s, s)
        return w, b

    w1, b1 = lin(ks[4], ks[5], 2 * embed, 32)   # Linear(60, 32)
    w2, b2 = lin(ks[6], ks[7], 32, 16)          # Linear(32, 16)
    w3, b3 = lin(ks[8], ks[9], 16, 8)           # Linear(16, 8)
    wa, ba = lin(ks[10], ks[11], 8 + embed, 1)  # affine_output: Linear(38, 1)
    return dict(
        user_emb_mlp=emb(ks[0], num_users),
        movie_emb_mlp=emb(ks[1], num_movies),
        user_emb_mf=emb(ks[2], num_users),
        movie_emb_mf=emb(ks[3], num_movies),
        w1=w1, b1=b1, w2=w2, b2=b2, w3=w3, b3=b3, wa=wa, ba=ba,
    )


def _ref_forward(user_idx, movie_idx, p, emb_dtype=jnp.bfloat16):
    """Pure-JAX reference matching NeuralCF.forward (embeddings quantized to the
    same storage dtype the kernel uses; note forward never applies Sigmoid)."""
    hp = jax.lax.Precision.HIGHEST
    f32 = jnp.float32
    u_mlp = p["user_emb_mlp"].astype(emb_dtype).astype(f32)[user_idx]
    m_mlp = p["movie_emb_mlp"].astype(emb_dtype).astype(f32)[movie_idx]
    u_mf = p["user_emb_mf"].astype(emb_dtype).astype(f32)[user_idx]
    m_mf = p["movie_emb_mf"].astype(emb_dtype).astype(f32)[movie_idx]
    x = jnp.concatenate([u_mlp, m_mlp], axis=-1)
    x = jax.nn.relu(jnp.dot(x, p["w1"], precision=hp) + p["b1"])
    x = jax.nn.relu(jnp.dot(x, p["w2"], precision=hp) + p["b2"])
    x = jax.nn.relu(jnp.dot(x, p["w3"], precision=hp) + p["b3"])
    v = jnp.concatenate([x, u_mf * m_mf], axis=-1)
    logits = jnp.dot(v, p["wa"], precision=hp) + p["ba"]
    logits = logits * _SCALE + _OFFSET
    return logits.reshape(-1)


if __name__ == "__main__":
    key = jax.random.PRNGKey(0)
    num_users, num_movies, embed, batch = 64, 128, 30, 512  # args.embed_size=30, batch_size=512

    k_params, k_u, k_m = jax.random.split(key, 3)
    params = init_params(k_params, num_users, num_movies, embed)
    prep = prepare_inference_params(params)

    user_idx = jax.random.randint(k_u, (batch,), 0, num_users, dtype=jnp.int32)
    movie_idx = jax.random.randint(k_m, (batch,), 0, num_movies, dtype=jnp.int32)

    out = neural_cf_forward(user_idx, movie_idx, prep)
    jax.block_until_ready(out)

    ref = _ref_forward(user_idx, movie_idx, params)
    assert out.shape == (batch,), out.shape
    max_err = float(jnp.max(jnp.abs(out - ref)))
    assert jnp.allclose(out, ref, rtol=2e-3, atol=2e-3), (max_err, out[:4], ref[:4])
    print("KERNEL_OK")
</pallas_src>

<mosaic_0001>
module attributes {stable_mosaic.version = 11 : i64} {
  func.func @_ncf_kernel(%arg0: i32, %arg1: memref<64x256xbf16, #tpu.memory_space<vmem>>, %arg2: memref<64x256xbf16, #tpu.memory_space<vmem>>, %arg3: memref<32x64xf32, #tpu.memory_space<vmem>>, %arg4: memref<32x64xf32, #tpu.memory_space<vmem>>, %arg5: memref<32x1xf32, #tpu.memory_space<vmem>>, %arg6: memref<16x32xf32, #tpu.memory_space<vmem>>, %arg7: memref<16x1xf32, #tpu.memory_space<vmem>>, %arg8: memref<8x16xf32, #tpu.memory_space<vmem>>, %arg9: memref<8x1xf32, #tpu.memory_space<vmem>>, %arg10: memref<1x8xf32, #tpu.memory_space<vmem>>, %arg11: memref<1x64xf32, #tpu.memory_space<vmem>>, %arg12: memref<1x1xf32, #tpu.memory_space<vmem>>, %arg13: memref<1x256xf32, #tpu.memory_space<vmem>>) attributes {dimension_semantics = [#tpu.dimension_semantics<parallel>], iteration_bounds = array<i64: 2>, scalar_prefetch = 0 : i64, scratch_operands = 0 : i64, tpu.core_type = #tpu.core_type<tc>, window_params = [{transform_indices = @transform_0, window_bounds = array<i64: 64, 256>}, {transform_indices = @transform_1, window_bounds = array<i64: 64, 256>}, {pipeline_mode = #tpu.pipeline_mode<synchronous>, transform_indices = @transform_2, window_bounds = array<i64: 32, 64>}, {pipeline_mode = #tpu.pipeline_mode<synchronous>, transform_indices = @transform_3, window_bounds = array<i64: 32, 64>}, {pipeline_mode = #tpu.pipeline_mode<synchronous>, transform_indices = @transform_4, window_bounds = array<i64: 32, 1>}, {pipeline_mode = #tpu.pipeline_mode<synchronous>, transform_indices = @transform_5, window_bounds = array<i64: 16, 32>}, {pipeline_mode = #tpu.pipeline_mode<synchronous>, transform_indices = @transform_6, window_bounds = array<i64: 16, 1>}, {pipeline_mode = #tpu.pipeline_mode<synchronous>, transform_indices = @transform_7, window_bounds = array<i64: 8, 16>}, {pipeline_mode = #tpu.pipeline_mode<synchronous>, transform_indices = @transform_8, window_bounds = array<i64: 8, 1>}, {pipeline_mode = #tpu.pipeline_mode<synchronous>, transform_indices = @transform_9, window_bounds = array<i64: 1, 8>}, {pipeline_mode = #tpu.pipeline_mode<synchronous>, transform_indices = @transform_10, window_bounds = array<i64: 1, 64>}, {pipeline_mode = #tpu.pipeline_mode<synchronous>, transform_indices = @transform_11, window_bounds = array<i64: 1, 1>}, {transform_indices = @transform_12, window_bounds = array<i64: 1, 256>}]} {
    %c0 = arith.constant 0 : index
    %c0_0 = arith.constant 0 : index
    %0 = vector.load %arg1[%c0, %c0_0] : memref<64x256xbf16, #tpu.memory_space<vmem>>, vector<64x256xbf16>
    %1 = arith.extf %0 : vector<64x256xbf16> to vector<64x256xf32>
    %c0_1 = arith.constant 0 : index
    %c0_2 = arith.constant 0 : index
    %2 = vector.load %arg2[%c0_1, %c0_2] : memref<64x256xbf16, #tpu.memory_space<vmem>>, vector<64x256xbf16>
    %3 = arith.extf %2 : vector<64x256xbf16> to vector<64x256xf32>
    %c0_3 = arith.constant 0 : index
    %c0_4 = arith.constant 0 : index
    %4 = vector.load %arg3[%c0_3, %c0_4] : memref<32x64xf32, #tpu.memory_space<vmem>>, vector<32x64xf32>
    %cst = arith.constant dense<0.000000e+00> : vector<32x256xf32>
    %5 = tpu.matmul %4, %1, %cst {dimension_numbers = #tpu.dot_dimension_numbers<[1], [0], [0], [1], [0, 0, 1, 1], [], []>} : vector<32x64xf32>, vector<64x256xf32>, vector<32x256xf32> -> vector<32x256xf32>
    %c0_5 = arith.constant 0 : index
    %c0_6 = arith.constant 0 : index
    %6 = vector.load %arg4[%c0_5, %c0_6] : memref<32x64xf32, #tpu.memory_space<vmem>>, vector<32x64xf32>
    %cst_7 = arith.constant dense<0.000000e+00> : vector<32x256xf32>
    %7 = tpu.matmul %6, %3, %cst_7 {dimension_numbers = #tpu.dot_dimension_numbers<[1], [0], [0], [1], [0, 0, 1, 1], [], []>} : vector<32x64xf32>, vector<64x256xf32>, vector<32x256xf32> -> vector<32x256xf32>
    %8 = arith.addf %5, %7 : vector<32x256xf32>
    %c0_8 = arith.constant 0 : index
    %c0_9 = arith.constant 0 : index
    %9 = vector.load %arg5[%c0_8, %c0_9] : memref<32x1xf32, #tpu.memory_space<vmem>>, vector<32x1xf32>
    %10 = vector.broadcast %9 : vector<32x1xf32> to vector<32x256xf32>
    %11 = arith.addf %8, %10 : vector<32x256xf32>
    %cst_10 = arith.constant 0.000000e+00 : f32
    %12 = vector.broadcast %cst_10 : f32 to vector<32x256xf32>
    %13 = arith.maximumf %11, %12 : vector<32x256xf32>
    %c0_11 = arith.constant 0 : index
    %c0_12 = arith.constant 0 : index
    %14 = vector.load %arg6[%c0_11, %c0_12] : memref<16x32xf32, #tpu.memory_space<vmem>>, vector<16x32xf32>
    %cst_13 = arith.constant dense<0.000000e+00> : vector<16x256xf32>
    %15 = tpu.matmul %14, %13, %cst_13 {dimension_numbers = #tpu.dot_dimension_numbers<[1], [0], [0], [1], [0, 0, 1, 1], [], []>} : vector<16x32xf32>, vector<32x256xf32>, vector<16x256xf32> -> vector<16x256xf32>
    %c0_14 = arith.constant 0 : index
    %c0_15 = arith.constant 0 : index
    %16 = vector.load %arg7[%c0_14, %c0_15] : memref<16x1xf32, #tpu.memory_space<vmem>>, vector<16x1xf32>
    %17 = vector.broadcast %16 : vector<16x1xf32> to vector<16x256xf32>
    %18 = arith.addf %15, %17 : vector<16x256xf32>
    %cst_16 = arith.constant 0.000000e+00 : f32
    %19 = vector.broadcast %cst_16 : f32 to vector<16x256xf32>
    %20 = arith.maximumf %18, %19 : vector<16x256xf32>
    %c0_17 = arith.constant 0 : index
    %c0_18 = arith.constant 0 : index
    %21 = vector.load %arg8[%c0_17, %c0_18] : memref<8x16xf32, #tpu.memory_space<vmem>>, vector<8x16xf32>
    %cst_19 = arith.constant dense<0.000000e+00> : vector<8x256xf32>
    %22 = tpu.matmul %21, %20, %cst_19 {dimension_numbers = #tpu.dot_dimension_numbers<[1], [0], [0], [1], [0, 0, 1, 1], [], []>} : vector<8x16xf32>, vector<16x256xf32>, vector<8x256xf32> -> vector<8x256xf32>
    %c0_20 = arith.constant 0 : index
    %c0_21 = arith.constant 0 : index
    %23 = vector.load %arg9[%c0_20, %c0_21] : memref<8x1xf32, #tpu.memory_space<vmem>>, vector<8x1xf32>
    %24 = vector.broadcast %23 : vector<8x1xf32> to vector<8x256xf32>
    %25 = arith.addf %22, %24 : vector<8x256xf32>
    %cst_22 = arith.constant 0.000000e+00 : f32
    %26 = vector.broadcast %cst_22 : f32 to vector<8x256xf32>
    %27 = arith.maximumf %25, %26 : vector<8x256xf32>
    %28 = arith.mulf %1, %3 : vector<64x256xf32>
    %c0_23 = arith.constant 0 : index
    %c0_24 = arith.constant 0 : index
    %29 = vector.load %arg10[%c0_23, %c0_24] : memref<1x8xf32, #tpu.memory_space<vmem>>, vector<1x8xf32>
    %cst_25 = arith.constant dense<0.000000e+00> : vector<1x256xf32>
    %30 = tpu.matmul %29, %27, %cst_25 {dimension_numbers = #tpu.dot_dimension_numbers<[1], [0], [0], [1], [0, 0, 1, 1], [], []>} : vector<1x8xf32>, vector<8x256xf32>, vector<1x256xf32> -> vector<1x256xf32>
    %c0_26 = arith.constant 0 : index
    %c0_27 = arith.constant 0 : index
    %31 = vector.load %arg11[%c0_26, %c0_27] : memref<1x64xf32, #tpu.memory_space<vmem>>, vector<1x64xf32>
    %cst_28 = arith.constant dense<0.000000e+00> : vector<1x256xf32>
    %32 = tpu.matmul %31, %28, %cst_28 {dimension_numbers = #tpu.dot_dimension_numbers<[1], [0], [0], [1], [0, 0, 1, 1], [], []>} : vector<1x64xf32>, vector<64x256xf32>, vector<1x256xf32> -> vector<1x256xf32>
    %33 = arith.addf %30, %32 : vector<1x256xf32>
    %c0_29 = arith.constant 0 : index
    %c0_30 = arith.constant 0 : index
    %34 = vector.load %arg12[%c0_29, %c0_30] : memref<1x1xf32, #tpu.memory_space<vmem>>, vector<1x1xf32>
    %35 = vector.broadcast %34 : vector<1x1xf32> to vector<1x256xf32>
    %36 = arith.addf %33, %35 : vector<1x256xf32>
    %c0_31 = arith.constant 0 : index
    %c0_32 = arith.constant 0 : index
    %37 = vector.load %arg13[%c0_31, %c0_32] : memref<1x256xf32, #tpu.memory_space<vmem>>, vector<1x256xf32>
    tpu.vector_store %arg13[%c0_31, %c0_32], %36 {strides = array<i32>} : memref<1x256xf32, #tpu.memory_space<vmem>>, vector<1x256xf32>,
    return
  }
  func.func @transform_0(%arg0: i32) -> (i32, i32) {
    %c0_i32 = arith.constant 0 : i32
    %c0_i32_0 = arith.constant 0 : i32
    return %c0_i32, %arg0 : i32, i32
  }
  func.func @transform_1(%arg0: i32) -> (i32, i32) {
    %c0_i32 = arith.constant 0 : i32
    %c0_i32_0 = arith.constant 0 : i32
    return %c0_i32, %arg0 : i32, i32
  }
  func.func @transform_2(%arg0: i32) -> (i32, i32) {
    %c0_i32 = arith.constant 0 : i32
    %c0_i32_0 = arith.constant 0 : i32
    %c0_i32_1 = arith.constant 0 : i32
    return %c0_i32, %c0_i32_0 : i32, i32
  }
  func.func @transform_3(%arg0: i32) -> (i32, i32) {
    %c0_i32 = arith.constant 0 : i32
    %c0_i32_0 = arith.constant 0 : i32
    %c0_i32_1 = arith.constant 0 : i32
    return %c0_i32, %c0_i32_0 : i32, i32
  }
  func.func @transform_4(%arg0: i32) -> (i32, i32) {
    %c0_i32 = arith.constant 0 : i32
    %c0_i32_0 = arith.constant 0 : i32
    %c0_i32_1 = arith.constant 0 : i32
    return %c0_i32, %c0_i32_0 : i32, i32
  }
  func.func @transform_5(%arg0: i32) -> (i32, i32) {
    %c0_i32 = arith.constant 0 : i32
    %c0_i32_0 = arith.constant 0 : i32
    %c0_i32_1 = arith.constant 0 : i32
    return %c0_i32, %c0_i32_0 : i32, i32
  }
  func.func @transform_6(%arg0: i32) -> (i32, i32) {
    %c0_i32 = arith.constant 0 : i32
    %c0_i32_0 = arith.constant 0 : i32
    %c0_i32_1 = arith.constant 0 : i32
    return %c0_i32, %c0_i32_0 : i32, i32
  }
  func.func @transform_7(%arg0: i32) -> (i32, i32) {
    %c0_i32 = arith.constant 0 : i32
    %c0_i32_0 = arith.constant 0 : i32
    %c0_i32_1 = arith.constant 0 : i32
    return %c0_i32, %c0_i32_0 : i32, i32
  }
  func.func @transform_8(%arg0: i32) -> (i32, i32) {
    %c0_i32 = arith.constant 0 : i32
    %c0_i32_0 = arith.constant 0 : i32
    %c0_i32_1 = arith.constant 0 : i32
    return %c0_i32, %c0_i32_0 : i32, i32
  }
  func.func @transform_9(%arg0: i32) -> (i32, i32) {
    %c0_i32 = arith.constant 0 : i32
    %c0_i32_0 = arith.constant 0 : i32
    %c0_i32_1 = arith.constant 0 : i32
    return %c0_i32, %c0_i32_0 : i32, i32
  }
  func.func @transform_10(%arg0: i32) -> (i32, i32) {
    %c0_i32 = arith.constant 0 : i32
    %c0_i32_0 = arith.constant 0 : i32
    %c0_i32_1 = arith.constant 0 : i32
    return %c0_i32, %c0_i32_0 : i32, i32
  }
  func.func @transform_11(%arg0: i32) -> (i32, i32) {
    %c0_i32 = arith.constant 0 : i32
    %c0_i32_0 = arith.constant 0 : i32
    %c0_i32_1 = arith.constant 0 : i32
    return %c0_i32, %c0_i32_0 : i32, i32
  }
  func.func @transform_12(%arg0: i32) -> (i32, i32) {
    %c0_i32 = arith.constant 0 : i32
    %c0_i32_0 = arith.constant 0 : i32
    return %c0_i32, %arg0 : i32, i32
  }
}

</mosaic_0001>

<bundles_post_ra>
// kernel: tpu_custom_call.1
= control target key start
LH: loop header
LB: loop body
LE: loop exit
PB: predicated region body
PF: predicated region fallthrough
CT: control target
= control target key end

     0   :  { %s2089_s0 = inlined_call_operand.hbm [shape: bf16[64,512], index: 0, kind: input, shape index: {}]   ;;  %s2090_s1 = inlined_call_operand.hbm [shape: bf16[64,512], index: 1, kind: input, shape index: {}]   ;;  %s2091_s2 = inlined_call_operand.vmem [shape: f32[32,64], index: 2, kind: input, shape index: {}]   ;;  %s2092_s3 = inlined_call_operand.vmem [shape: f32[32,64], index: 3, kind: input, shape index: {}]   ;;  %s2093_s4 = inlined_call_operand.vmem [shape: f32[32,1], index: 4, kind: input, shape index: {}]   ;;  %s2094_s5 = inlined_call_operand.vmem [shape: f32[16,32], index: 5, kind: input, shape index: {}]   ;;  %s2095_s6 = inlined_call_operand.vmem [shape: f32[16,1], index: 6, kind: input, shape index: {}]   ;;  %s2096_s7 = inlined_call_operand.vmem [shape: f32[8,16], index: 7, kind: input, shape index: {}]   ;;  %s2097_s8 = inlined_call_operand.vmem [shape: f32[8,1], index: 8, kind: input, shape index: {}]   ;;  %s2098_s9 = inlined_call_operand.vmem [shape: f32[1,8], index: 9, kind: input, shape index: {}]   ;;  %s2099_s10 = inlined_call_operand.vmem [shape: f32[1,64], index: 10, kind: input, shape index: {}]   ;;  %s2100_s11 = inlined_call_operand.<no memory space> [shape: f32[1,1], index: 11, kind: input, shape index: {}]   ;;  %s2101_s12 = inlined_call_operand.hbm [shape: f32[1,512], index: 12, kind: output, shape index: {}]  }
   0x1   :  { %2113 = sst [smem:[#allocation17_spill]] %s2089_s0  ;;  %v17_v0 = vstv %s2100_s11 }
   0x2   :  { %2114 = sst [smem:[#allocation18_spill]] %s2101_s12  ;;  %18 = vst [vmem:[#allocation2] sm:$0x1] %v17_v0 }
   0x3   :  { %19 = vsyncpa [#allocation4], 0 }
   0x4   :  { %21 = vsyncpa [#allocation4 + $0x1], 0 }
   0x5   :  { %22 = vsyncpa [#allocation7], 0 }
   0x6   :  { %24 = vsyncpa [#allocation7 + $0x1], 0 }
   0x7   :  { %25 = vsyncpa [#allocation5], 0 }
   0x8   :  { %27 = vsyncpa [#allocation5 + $0x1], 0  ;;  %s1676_s23 = smov 0   ;;  %s1678_s24 = smov 0  }
   0x9   :  { %s1680_s25 = smov 0   ;;  %s1682_s26 = smov 0  }
   0xa LB: > { %2115 = sst [smem:[#allocation12_spill]] %s1585_s23  ;;  %s1697_s11 = sadd.s32 4294967295, %s1597_s26   ;;  %s1597_s26 = sphi %s1682_s26, %s2139_s26   ;;  %s1593_s25 = sphi %s1680_s25, %s2141_s25   ;;  %s1589_s24 = sphi %s1678_s24, %s2143_s24   ;;  %s1585_s23 = sphi %s1676_s23, %s2142_s23  }
   0xb   : > { %2116 = sst [smem:[#allocation13_spill]] %s1593_s25  ;;  %s1272_s27 = sadd.s32 4294967294, %s1597_s26  }
   0xc   : > { %s1701_s28 = sadd.s32 1, %s1597_s26   ;;  %s40_s29 = sadd.s32 1, %s1593_s25 }
   0xd   : > { %2117 = sst [smem:[#allocation14_spill]] %s1701_s28  ;;  %s37_s30 = ssub.s32 %s1597_s26, %s1701_s28 }
   0xe   : > { %p47_p0 = scmp.ne.s32.totalorder %s1593_s25, %s1589_s24  ;;  %p38_p1 = scmp.eq.s32.totalorder %s37_s30, 0 }
   0xf   : > { %p48_p2 = scmp.eq.s32.totalorder %s1597_s26, 0  ;;  %p53_p3 = scmp.ne.s32.totalorder %s1589_s24, %s1585_s23 }
  0x10   : > { %p54_p4 = scmp.eq.s32.totalorder %s1697_s11, 0  ;;  %p313_p7 = scmp.eq.s32.totalorder %s1697_s11, 1 }
  0x11   : > { %s1713_s13 = scalar_select %p38_p1, %s1593_s25, %s40_s29  }
  0x12   : > { %p1715_p5 = por %p48_p2, %p47_p0  ;;  %p1719_p6 = por %p54_p4, %p53_p3 }
  0x13   : > { %2118 = sst [smem:[#allocation15_spill]] %s1713_s13  ;;  %p319_p8 = scmp.eq.s32.totalorder %s1272_s27, 1 }
  0x14   : > { %s2120_s15 = scalar_select %p1719_p6, 1, 0 }
  0x15   : > { %p1409_p10 = scmp.lt.s32.totalorder %s1597_s26, 2  ;;  %p1726_p11 = por %p313_p7, %p47_p0 }
  0x16   : > { %p1730_p12 = por %p319_p8, %p53_p3  ;;  %s1735_s18 = sand.u32 1, %s1593_s25  }
  0x17   : > { %s2121_s16 = scalar_select %p1726_p11, 1, 0 }
  0x18   : > { %s2122_s17 = scalar_select %p1730_p12, 1, 0 }
  0x19   : > { %s2103_s19 = sshll.u32 %s1597_s26, 7  ;;  %s2102_s20 = sshll.u32 %s1735_s18, 6 }
  0x1a   : > { %2123 = sst [smem:[#allocation16_spill]] %s2122_s17  ;;  %s2124_s0 = sld [smem:[#allocation17_spill]] }
  0x1b   : > { %s373_s29 = scalar_lea.vmem [#allocation3], %s2102_s20  ;;  %p1750_p13 = pnand %p1409_p10, %p1715_p5 }
  0x1c   : > { %s380_s30 = sshll.u32 %s373_s29, 4  ;;  %s1754_s30 = int_to_ptr.vmem [resolvable:$true] %s380_s30 }
  0x1d   : > { %p1469_p2 = pneg %p1750_p13 }
  0x20   : > { %s1744_s27 = scalar_lea.hbm %s2124_s0, %s2103_s19  ;;  %s1472_s20 = scalar_lea.hbm %s2124_s0, 2048 }
  0x21   : > { %s1467_s22 = scalar_lea.hbm %s1744_s27, 1024  ;;  %p1473_p5 = scmp.lt.u32.totalorder %s1744_s27, %s2124_s0 }
  0x22   : > { %p1468_p1 = scmp.ne.s32.totalorder %s1744_s27, %s1467_s22  ;;  %p1474_p7 = scmp.lt.u32.totalorder %s1472_s20, %s1467_s22 }
  0x23   : > { %p1476_p10 = scmp.lt.u32.totalorder %s1467_s22, %s1744_s27 }
  0x24   : > { %p1470_p3 = pnand %p1469_p2, %p1468_p1  ;;  %p1475_p8 = por %p1474_p7, %p1473_p5 }
  0x26   : > { %p1471_p4 = pneg %p1470_p3  ;;  %p1477_p9 = por %p1476_p10, %p1475_p8 }
  0x28   : > { %p1478_p0 = pnand %p1477_p9, %p1471_p4 }
  0x2a   : > { %1481 = shalt.err (!%p1478_p0)
}
  0x2b   : > { %s1482_s21 = scalar_lea.vmem %s1754_s30, 1024  ;;  %s1599_s29 = smov [#allocation3]  }
  0x2c   : > { %p1483_p1 = scmp.ne.s32.totalorder %s1754_s30, %s1482_s21  ;;  %s1487_s14 = sshll.u32 %s1599_s29, 4  ;;  %s1488_s14 = int_to_ptr.vmem [resolvable:$false] %s1487_s14 }
  0x2d   : > { %s1489_s25 = scalar_lea.vmem %s1488_s14, 2048  ;;  %p1490_p11 = scmp.lt.s32.totalorder %s1754_s30, %s1488_s14 }
  0x2e   : > { %p1485_p3 = pnand %p1483_p1, %p1469_p2  ;;  %p1491_p5 = scmp.lt.s32.totalorder %s1489_s25, %s1482_s21 }
  0x30   : > { %p1486_p12 = pneg %p1485_p3  ;;  %p1492_p7 = por %p1491_p5, %p1490_p11 }
  0x32   : > { %p1493_p8 = pnand %p1492_p7, %p1486_p12 }
  0x34   : > { %1496 = shalt.err (!%p1493_p8)
}
  0x35   : > { %s2111_s19 = smov 256   ;;  %s1601_s20 = smov 128  }
  0x36   : > { %s1602_s22 = smov 8   ;;  %s2126_s21 = scalar_lea.sflag [#allocation4], %s1735_s18 }
  0x37   : > { %1401 = dma.hbm_to_vmem [thread:$0]  (!%p1750_p13), %s1744_s27, 1024, %s1754_s30, %s2126_s21, %s2111_s19, %s1601_s20, %s1602_s22  }
  0x38   : > { %p409_p9 = scmp.lt.s32.totalorder %s1597_s26, 3  ;;  %s2127_s29 = sshll.u32 %s1597_s26, 7 }
  0x39   : > { %s1794_s0 = scalar_lea.hbm %s2090_s1, %s2127_s29  ;;  %p2128_p11 = scmp.ge.s32.totalorder %s1597_s26, 1 }
  0x3a   : > { %s2130_s17 = sshll.u32 %s1735_s18, 6  ;;  %s391_s27 = scalar_lea.sflag [#allocation7], %s1735_s18 }
  0x3b   : > { %p1798_p12 = pnand %p2128_p11, %p409_p9  ;;  %s394_s23 = scalar_lea.vmem [#allocation6], %s2130_s17 }
  0x3c   : > { %s401_s12 = sshll.u32 %s394_s23, 4  ;;  %s1497_s30 = scalar_lea.hbm %s1794_s0, 1024  ;;  %s1804_s12 = int_to_ptr.vmem [resolvable:$true] %s401_s12 }
  0x3d   : > { %p1498_p0 = scmp.ne.s32.totalorder %s1794_s0, %s1497_s30  ;;  %s1502_s14 = scalar_lea.hbm %s2090_s1, 2048 }
  0x3e   : > { %p1503_p1 = scmp.lt.u32.totalorder %s1794_s0, %s2090_s1  ;;  %p1504_p3 = scmp.lt.u32.totalorder %s1502_s14, %s1497_s30 }
  0x3f   : > { %p1500_p4 = pnand %p1498_p0, %p1469_p2  ;;  %p1506_p7 = scmp.lt.u32.totalorder %s1497_s30, %s1794_s0 }
  0x40   : > { %p1505_p5 = por %p1504_p3, %p1503_p1 }
  0x41   : > { %p1501_p10 = pneg %p1500_p4 }
  0x42   : > { %p1507_p8 = por %p1506_p7, %p1505_p5 }
  0x44   : > { %p1508_p9 = pnand %p1507_p8, %p1501_p10 }
  0x46   : > { %1511 = shalt.err (!%p1508_p9)
}
  0x47   : > { %s1512_s23 = scalar_lea.vmem %s1804_s12, 1024  ;;  %s1603_s17 = smov [#allocation6]  }
  0x48   : > { %p1513_p11 = scmp.ne.s32.totalorder %s1804_s12, %s1512_s23  ;;  %s1517_s21 = sshll.u32 %s1603_s17, 4  ;;  %s1518_s21 = int_to_ptr.vmem [resolvable:$false] %s1517_s21 }
  0x49   : > { %s1519_s19 = scalar_lea.vmem %s1518_s21, 2048  ;;  %p1520_p6 = scmp.lt.s32.totalorder %s1804_s12, %s1518_s21 }
  0x4a   : > { %p1515_p0 = pnand %p1513_p11, %p1469_p2  ;;  %p1521_p1 = scmp.lt.s32.totalorder %s1519_s19, %s1512_s23 }
  0x4c   : > { %p1516_p4 = pneg %p1515_p0  ;;  %p1522_p3 = por %p1521_p1, %p1520_p6 }
  0x4e   : > { %p1523_p5 = pnand %p1522_p3, %p1516_p4 }
  0x50   : > { %1526 = shalt.err (!%p1523_p5)
}
  0x51   : > { %s2131_s30 = smov 256   ;;  %413 = sbr.rel (%p1798_p12) target bundleno = 1042 (0x412), region = 68 }
  0x52   : > { %1404 = dma.hbm_to_vmem [thread:$0]  (!%p1750_p13), %s1794_s0, 1024, %s1804_s12, %s391_s27, %s2131_s30, %s1601_s20, %s1602_s22  }
  0x53   : > { %s1838_s29 = sand.u32 (!%p1798_p12), 1, %s1589_s24   ;;  %p2132_p6 = scmp.ne.s32.totalorder (!%p1798_p12), %s2120_s15, 0 }
  0x54   : > { %s1282_s14 = sshll.u32 (!%p1798_p12), %s1838_s29, 6  ;;  %s416_s25 = scalar_lea.sflag (!%p1798_p12), [#allocation4], %s1838_s29 }
  0x55   : > { %s1842_s13 = scalar_lea.vmem (!%p1798_p12), [#allocation3], %s1282_s14 }
  0x58   : > { %1572 = dma.done.wait (%p2132_p6), %s416_s25, 1024  }
  0x59   : > { %1574 = vsyncadd (%p2132_p6), %s416_s25, 4294966272  ;;  %s425_s0 = scalar_lea.sflag [#allocation7], %s1838_s29  ;;  %s428_s12 = scalar_lea.vmem [#allocation6], %s1282_s14 }
  0x5a   : > { %1576 = dma.done.wait (%p2132_p6), %s425_s0, 1024  }
  0x5b   : > { %1578 = vsyncadd (%p2132_p6), %s425_s0, 4294966272  ;;  %v1604_v1 = vmov 0.0   ;;  %v1605_v2 = vmov 0   ;;  %v1855_v3 = vld [vmem:[%s428_s12] sm:$0xff]  ;;  %v1857_v4 = vld [vmem:[%s428_s12 + $0x8] sm:$0xff]  ;;  %vm533_vm0 = vcmask 523264  }
  0x5c   : > { %610 = vmatprep.mubr.f32.mxu0 %v1604_v1  ;;  %1449 = vset.pattern.permute.xlu0 %v1605_v2  ;;  %v1859_v5 = vld [vmem:[%s428_s12 + $0x10] sm:$0xff]  ;;  %v1376_v6 = vcombine.high %v1855_v3, %v1857_v4  ;;  %v1377_v7 = vcombine.low %v1855_v3, %v1857_v4  ;;  %v1865_v8 = vld [vmem:[%s428_s12 + $0x18] sm:$0xff]  ;;  %v1869_v10 = vld [vmem:[%s428_s12 + $0x20] sm:$0xff]  ;;  %vm790_vm1 = vcmask 261120   ;;  %vm885_vm2 = vcmask 130048   ;;  %s1284_s21 = sshll.u32 %s1838_s29, 1 }
  0x5d   : > { %1450 = vset.pattern.permute.xlu1 %v1605_v2  ;;  %861 = vmatprep.mubr.f32.mxu1 %v1604_v1  ;;  %v1378_v9 = vcombine.high %v1859_v5, %v1865_v8  ;;  %v1871_v11 = vld [vmem:[%s428_s12 + $0x28] sm:$0xff]  ;;  %v1379_v12 = vcombine.low %v1859_v5, %v1865_v8  ;;  %v1877_v14 = vld [vmem:[%s428_s12 + $0x30] sm:$0xff]  ;;  %v1879_v15 = vld [vmem:[%s428_s12 + $0x38] sm:$0xff]  ;;  %vm1054_vm3 = vcmask 64512   ;;  %s1305_s19 = sshll.u32 %s1697_s11, 5  ;;  %s473_s30 = scalar_lea.vmem [#allocation8], %s1284_s21 }
  0x5e   : > { %1307 = vmatprep.subr.bf16.mxu0 %v1376_v6  ;;  %v1380_v13 = vcombine.high %v1869_v10, %v1871_v11  ;;  %v1381_v16 = vcombine.low %v1869_v10, %v1871_v11  ;;  %v736_v17 = vld [vmem:[%s2093_s4] sm:$0xff]  ;;  %v738_v18 = vld [vmem:[%s2093_s4 + $0x10] sm:$0xff]  ;;  %v1382_v19 = vcombine.high %v1877_v14, %v1879_v15  ;;  %v737_v22 = vld [vmem:[%s2093_s4 + $0x8] sm:$0xff]  ;;  %v1383_v24 = vcombine.low %v1877_v14, %v1879_v15  ;;  %s1179_s14 = sshll.u32 %s473_s30, 4  ;;  %s2133_s12 = sld [smem:[#allocation18_spill]]  ;;  %s2047_s14 = int_to_ptr.vmem [resolvable:$true] %s1179_s14 }
  0x5f   : > { %1309 = vmatpush1.bf16.msra.mxu0 %v1377_v7  ;;  %742 = vperm.xlu0 %1449, %v736_v17   ;;  %v1892_v20 = vld [vmem:[%s1842_s13] sm:$0xff]  ;;  %v1895_v21 = vld [vmem:[%s1842_s13 + $0x8] sm:$0xff]  ;;  %v739_v23 = vld [vmem:[%s2093_s4 + $0x18] sm:$0xff]  ;;  %s1165_s15 = scalar_lea.sflag [#allocation5], %s1838_s29  ;;  %s1527_s18 = scalar_lea.vmem %s2047_s14, 32 }
  0x60   : > { %1311 = vmatprep.subr.bf16.mxu0 %v1378_v9  ;;  %752 = vperm.xlu1 %1450, %v738_v18   ;;  %v1384_v25 = vcombine.high %v1892_v20, %v1895_v21  ;;  %v1908_v26 = vld [vmem:[%s1842_s13 + $0x10] sm:$0xff]  ;;  %v1911_v27 = vld [vmem:[%s1842_s13 + $0x18] sm:$0xff]  ;;  %v779_v29 = vld [vmem:[%s2095_s6 + $0x8] sm:$0xff]  ;;  %v1385_v31 = vcombine.low %v1892_v20, %v1895_v21  ;;  %p1528_p13 = scmp.ne.s32.totalorder %s2047_s14, %s1527_s18  ;;  %p2134_p2 = scmp.ne.s32.totalorder %s2121_s16, 0 }
  0x61   : > { %v778_v28 = vld [vmem:[%s2095_s6] sm:$0xff]  ;;  %v1386_v32 = vcombine.high %v1908_v26, %v1911_v27  ;;  %v1930_v34 = vld [vmem:[%s1842_s13 + $0x28] sm:$0xff]  ;;  %v1387_v38 = vcombine.low %v1908_v26, %v1911_v27  ;;  %v1945_v40 = vld [vmem:[%s1842_s13 + $0x30] sm:$0xff]  ;;  %s1607_s11 = smov [#allocation8]  }
  0x62   : > { %v529_v30 = vld [vmem:[%s2092_s3] sm:$0xff]  ;;  %v530_v37 = vld [vmem:[%s2092_s3 + $0x8] sm:$0xff]  ;;  %v531_v42 = vld [vmem:[%s2092_s3 + $0x10] sm:$0xff]  ;;  %p1529_p12 = pnand %p1528_p13, %p2134_p2  ;;  %s1531_s20 = sshll.u32 %s1607_s11, 4  ;;  %s1532_s20 = int_to_ptr.vmem [resolvable:$false] %s1531_s20 }
  0x63   : > { %1313 = vmatpush1.bf16.msra.mxu0 %v1379_v12  ;;  %747 = vperm.xlu0 %1449, %v737_v22   ;;  %v1927_v33 = vld [vmem:[%s1842_s13 + $0x20] sm:$0xff]  ;;  %v1129_v36 = vld [vmem:[#allocation2] sm:$0x1]  ;;  %v532_v45 = vld [vmem:[%s2092_s3 + $0x18] sm:$0xff]  ;;  %s1533_s22 = scalar_lea.vmem %s1532_s20, 64  ;;  %p1534_p7 = scmp.lt.s32.totalorder %s2047_s14, %s1532_s20 }
  0x64   : > { %1315 = vmatprep.subr.bf16.mxu0 %v1380_v13  ;;  %757 = vperm.xlu1 %1450, %v739_v23   ;;  %v879_v35 = vld [vmem:[%s2097_s8] sm:$0xff]  ;;  %v1388_v39 = vcombine.high %v1927_v33, %v1930_v34  ;;  %v1389_v43 = vcombine.low %v1927_v33, %v1930_v34  ;;  %v526_v48 = vld [vmem:[%s2091_s2 + $0x8] sm:$0xff]  ;;  %v527_v49 = vld [vmem:[%s2091_s2 + $0x10] sm:$0xff]  ;;  %s2045_s28 = scalar_lea.hbm %s2133_s12, %s1305_s19  ;;  %p1530_p10 = pneg %p1529_p12 }
  0x65   : > { %v1948_v41 = vld [vmem:[%s1842_s13 + $0x38] sm:$0xff]  ;;  %p1535_p8 = scmp.lt.s32.totalorder %s1533_s22, %s1527_s18 }
  0x66   : > { %v1390_v44 = vcombine.high %v1945_v40, %v1948_v41  ;;  %v1391_v46 = vcombine.low %v1945_v40, %v1948_v41  ;;  %v525_v47 = vld [vmem:[%s2091_s2] sm:$0xff]  ;;  %v528_v50 = vld [vmem:[%s2091_s2 + $0x18] sm:$0xff] }
  0x67   : > { %1317 = vmatpush1.bf16.msra.mxu0 %v1381_v16  ;;  %782 = vperm.xlu0 %1449, %v778_v28   ;;  %p1536_p9 = por %p1535_p8, %p1534_p7 }
  0x68   : > { %1319 = vmatprep.subr.bf16.mxu0 %v1382_v19  ;;  %787 = vperm.xlu1 %1450, %v779_v29  }
  0x69   : > { %p1537_p11 = pnand %p1536_p9, %p1530_p10 }
  0x6b   : > { %1321 = vmatpush1.bf16.msra.mxu0 %v1383_v24  ;;  %882 = vperm.xlu0 %1449, %v879_v35   ;;  %v777_v35 = vld [vmem:[%s2094_s5 + $0x8] sm:$0xff] }
  0x6c   : > { %1323 = vmatprep.subr.bf16.mxu0 %v1384_v25  ;;  %1132 = vperm.xlu1 %1450, %v1129_v36   ;;  %v509_v36 = vunpack.c.l.bf16 %v1855_v3 }
  0x6e   : > { %1285 = vmatmul.mubr.msk.f32.vlgmr.msra.gmra.mrb[0].mxu0 %vm533_vm0, %v529_v30 }
  0x6f   : > { %1325 = vmatpush1.bf16.msra.mxu0 %v1385_v31  ;;  %616 = vmatprep.mubr.f32.mxu0 %v1604_v1 }
  0x70   : > { %1327 = vmatprep.subr.bf16.mxu0 %v1386_v32  ;;  %v776_v32 = vld [vmem:[%s2094_s5] sm:$0xff] }
  0x72   : > { %1286 = vmatmul.mubr.msk.f32.gmra.mrb[2].mxu0 %vm533_vm0, %v530_v37  ;;  %v511_v37 = vunpack.c.l.bf16 %v1857_v4 }
  0x73   : > { %1329 = vmatpush1.bf16.msra.mxu0 %v1387_v38  ;;  %622 = vmatprep.mubr.f32.mxu0 %v1604_v1 }
  0x74   : > { %1331 = vmatprep.subr.bf16.mxu0 %v1388_v39  ;;  %v486_v39 = vunpack.c.h.bf16 %v1892_v20 }
  0x76   : > { %1287 = vmatmul.mubr.msk.f32.gmra.mrb[4].mxu0 %vm533_vm0, %v531_v42  ;;  %v510_v42 = vunpack.c.h.bf16 %v1855_v3  ;;  %v492_v3 = vunpack.c.h.bf16 %v1911_v27 }
  0x77   : > { %1333 = vmatpush1.bf16.msra.mxu0 %v1389_v43  ;;  %628 = vmatprep.mubr.f32.mxu0 %v1604_v1 }
  0x78   : > { %1335 = vmatprep.subr.bf16.mxu0 %v1390_v44  ;;  %v488_v44 = vunpack.c.h.bf16 %v1895_v21 }
  0x7a   : > { %1288 = vmatmul.mubr.msk.f32.gmra.mrb[6].mxu0 %vm533_vm0, %v532_v45  ;;  %v512_v45 = vunpack.c.h.bf16 %v1857_v4 }
  0x7b   : > { %1337 = vmatpush1.bf16.msra.mxu0 %v1391_v46  ;;  %711 = vmatprep.mubr.f32.mxu0 %v1604_v1  ;;  %v485_v46 = vunpack.c.l.bf16 %v1892_v20 }
  0x7d   : > { %v962_v20 = vmul.f32 %v509_v36, %v485_v46 }
  0x7e   : > { %1289 = vmatmul.mubr.msk.f32.vlgmr.msra.gmra.mrb[0].mxu0 %vm533_vm0, %v525_v47  ;;  %v487_v47 = vunpack.c.l.bf16 %v1895_v21 }
  0x7f   : > { %717 = vmatprep.mubr.f32.mxu0 %v1604_v1 }
  0x82   : > { %1290 = vmatmul.mubr.msk.f32.gmra.mrb[2].mxu0 %vm533_vm0, %v526_v48 }
  0x83   : > { %723 = vmatprep.mubr.f32.mxu0 %v1604_v1 }
  0x86   : > { %1291 = vmatmul.mubr.msk.f32.gmra.mrb[4].mxu0 %vm533_vm0, %v527_v49  ;;  %v490_v49 = vunpack.c.h.bf16 %v1908_v26 }
  0x87   : > { %729 = vmatprep.mubr.f32.mxu0 %v1604_v1 }
  0x8a   : > { %1292 = vmatmul.mubr.msk.f32.gmra.mrb[6].mxu0 %vm533_vm0, %v528_v50  ;;  %v514_v50 = vunpack.c.h.bf16 %v1859_v5 }
  0xde   : > { %v743_v51 = vpop.permute.xlu0 %742 }
  0xdf   : > { %v753_v60 = vpop.permute.xlu1 %752 }
  0xe2   : > { %v748_v55 = vpop.permute.xlu0 %747 }
  0xe3   : > { %v758_v16 = vpop.permute.xlu1 %757 }
  0xe6   : > { %v783_v48 = vpop.permute.xlu0 %782 }
 0x151   : > { %v713_v52 = vpop.f32.mrb[0].mxu0 }
 0x152   : > { %v715_v53 = vpop.f32.mrb[1].mxu0  ;;  %v760_v54 = vadd.f32 %v743_v51, %v713_v52  ;;  %v788_v52 = vpop.permute.xlu1 %787 }
 0x153   : > { %v761_v56 = vadd.f32 %v743_v51, %v715_v53 }
 0x154   : > { %v768_v62 = vmax.f32 %v760_v54, 0.0 }
 0x155   : > { %v719_v57 = vpop.f32.mrb[2].mxu0  ;;  %v769_v0 = vmax.f32 %v761_v56, 0.0  ;;  %v516_v56 = vunpack.c.h.bf16 %v1865_v8 }
 0x156   : > { %v762_v58 = vadd.f32 %v748_v55, %v719_v57  ;;  %v721_v59 = vpop.f32.mrb[3].mxu0 }
 0x157   : > { %v763_v61 = vadd.f32 %v748_v55, %v721_v59  ;;  %v963_v55 = vmul.f32 %v510_v42, %v486_v39  ;;  %v964_v59 = vmul.f32 %v511_v37, %v487_v47  ;;  %v499_v39 = vunpack.c.l.bf16 %v1948_v41 }
 0x158   : > { %v770_v63 = vmax.f32 %v762_v58, 0.0  ;;  %v965_v58 = vmul.f32 %v512_v45, %v488_v44  ;;  %v521_v42 = vunpack.c.l.bf16 %v1877_v14 }
 0x159   : > { %v771_v2 = vmax.f32 %v763_v61, 0.0  ;;  %v725_v6 = vpop.f32.mrb[4].mxu0  ;;  %v489_v61 = vunpack.c.l.bf16 %v1908_v26  ;;  %v520_v26 = vunpack.c.h.bf16 %v1871_v11 }
 0x15a   : > { %v727_v7 = vpop.f32.mrb[5].mxu0  ;;  %v1340_v9 = vpack.c.bf16 %v770_v63, %v768_v62  ;;  %v764_v13 = vadd.f32 %v753_v60, %v725_v6  ;;  %v491_v62 = vunpack.c.l.bf16 %v1911_v27  ;;  %v515_v6 = vunpack.c.l.bf16 %v1865_v8 }
 0x15b   : > { %v1338_v12 = vpack.c.bf16 %v771_v2, %v769_v0  ;;  %v765_v17 = vadd.f32 %v753_v60, %v727_v7  ;;  %v967_v60 = vmul.f32 %v514_v50, %v490_v49  ;;  %v513_v2 = vunpack.c.l.bf16 %v1859_v5 }
 0x15c   : > { %v772_v24 = vmax.f32 %v764_v13, 0.0  ;;  %v494_v13 = vunpack.c.h.bf16 %v1927_v33  ;;  %v1350_v27 = vpack.c.bf16 %v965_v58, %v963_v55  ;;  %v493_v5 = vunpack.c.l.bf16 %v1927_v33 }
 0x15d   : > { %v731_v18 = vpop.f32.mrb[6].mxu0  ;;  %1339 = vmatprep.subr.bf16.mxu1 %v1338_v12  ;;  %v773_v28 = vmax.f32 %v765_v17, 0.0  ;;  %v969_v12 = vmul.f32 %v516_v56, %v492_v3  ;;  %v496_v17 = vunpack.c.h.bf16 %v1930_v34  ;;  %v495_v8 = vunpack.c.l.bf16 %v1930_v34  ;;  %v978_v3 = vld [vmem:[%s2098_s9] sm:$0x1] }
 0x15e   : > { %v766_v19 = vadd.f32 %v758_v16, %v731_v18  ;;  %v733_v22 = vpop.f32.mrb[7].mxu0  ;;  %1341 = vmatpush1.bf16.msra.mxu1 %v1340_v9  ;;  %v518_v18 = vunpack.c.h.bf16 %v1869_v10  ;;  %v500_v33 = vunpack.c.h.bf16 %v1948_v41  ;;  %v522_v34 = vunpack.c.h.bf16 %v1877_v14  ;;  %v979_v14 = vld [vmem:[%s2099_s10] sm:$0x1] }
 0x15f   : > { %v767_v23 = vadd.f32 %v758_v16, %v733_v22  ;;  %v966_v22 = vmul.f32 %v513_v2, %v489_v61  ;;  %v1135_v56 = vlaneseq }
 0x160   : > { %v774_v25 = vmax.f32 %v766_v19, 0.0 }
 0x161   : > { %v775_v29 = vmax.f32 %v767_v23, 0.0  ;;  %v968_v23 = vmul.f32 %v515_v6, %v491_v62  ;;  %vm1161_vm4 = vcmp.lt.s32.totalorder %v1135_v56, 256 }
 0x162   : > { %v1344_v30 = vpack.c.bf16 %v774_v25, %v772_v24  ;;  %v517_v24 = vunpack.c.l.bf16 %v1869_v10  ;;  %v519_v25 = vunpack.c.l.bf16 %v1871_v11  ;;  %v524_v10 = vunpack.c.h.bf16 %v1879_v15 }
 0x163   : > { %v1342_v31 = vpack.c.bf16 %v775_v29, %v773_v28  ;;  %v878_v28 = vld [vmem:[%s2096_s7] sm:$0xff]  ;;  %v1352_v29 = vpack.c.bf16 %v964_v59, %v962_v20  ;;  %v1356_v11 = vpack.c.bf16 %v968_v23, %v966_v22  ;;  %v1133_v20 = vpop.permute.xlu1 %1132 }
 0x164   : > { %v970_v36 = vmul.f32 %v517_v24, %v493_v5  ;;  %v972_v37 = vmul.f32 %v519_v25, %v495_v8  ;;  %v977_v46 = vmul.f32 %v524_v10, %v500_v33 }
 0x165   : > { %1343 = vmatprep.subr.bf16.mxu1 %v1342_v31  ;;  %v971_v31 = vmul.f32 %v518_v18, %v494_v13 }
 0x166   : > { %1345 = vmatpush1.bf16.msra.mxu1 %v1344_v30  ;;  %v1354_v30 = vpack.c.bf16 %v969_v12, %v967_v60  ;;  %v1360_v47 = vpack.c.bf16 %v972_v37, %v970_v36 }
 0x169   : > { %1293 = vmatmul.mubr.msk.f32.vlgmr.msra.gmra.mrb[0].mxu1 %vm790_vm1, %v776_v32  ;;  %v973_v32 = vmul.f32 %v520_v26, %v496_v17 }
 0x16a   : > { %867 = vmatprep.mubr.f32.mxu1 %v1604_v1 }
 0x16b   : > { %v1358_v44 = vpack.c.bf16 %v973_v32, %v971_v31 }
 0x16d   : > { %1294 = vmatmul.mubr.msk.f32.gmra.mrb[2].mxu1 %vm790_vm1, %v777_v35  ;;  %v498_v35 = vunpack.c.h.bf16 %v1945_v40 }
 0x16e   : > { %953 = vmatprep.mubr.f32.mxu1 %v1604_v1 }
 0x16f   : > { %v975_v45 = vmul.f32 %v522_v34, %v498_v35 }
 0x171   : > { %v1362_v50 = vpack.c.bf16 %v977_v46, %v975_v45 }
 0x23c   : > { %v863_v38 = vpop.f32.mrb[0].mxu1 }
 0x23d   : > { %v865_v43 = vpop.f32.mrb[1].mxu1  ;;  %v864_v51 = vadd.f32 %v863_v38, %v783_v48  ;;  %v497_v38 = vunpack.c.l.bf16 %v1945_v40 }
 0x23e   : > { %v866_v53 = vadd.f32 %v865_v43, %v783_v48  ;;  %v523_v43 = vunpack.c.l.bf16 %v1879_v15  ;;  %v883_v15 = vpop.permute.xlu0 %882 }
 0x23f   : > { %v874_v63 = vmax.f32 %v864_v51, 0.0  ;;  %v974_v48 = vmul.f32 %v521_v42, %v497_v38 }
 0x240   : > { %v869_v54 = vpop.f32.mrb[2].mxu1  ;;  %v875_v7 = vmax.f32 %v866_v53, 0.0  ;;  %v976_v49 = vmul.f32 %v523_v43, %v499_v39 }
 0x241   : > { %v870_v57 = vadd.f32 %v869_v54, %v788_v52  ;;  %v871_v4 = vpop.f32.mrb[3].mxu1 }
 0x242   : > { %v872_v21 = vadd.f32 %v871_v4, %v788_v52  ;;  %v1364_v40 = vpack.c.bf16 %v976_v49, %v974_v48 }
 0x243   : > { %v876_v0 = vmax.f32 %v870_v57, 0.0  ;;  %v1136_v57 = vshrl.u32 %v1135_v56, 7 }
 0x244   : > { %v877_v9 = vmax.f32 %v872_v21, 0.0 }
 0x245   : > { %v1348_v16 = vpack.c.bf16 %v876_v0, %v874_v63  ;;  %v1137_v58 = vsub.s32 0, %v1136_v57 }
 0x246   : > { %v1346_v19 = vpack.c.bf16 %v877_v9, %v875_v7 }
 0x247   : > { %v1138_v21 = vrot.slane %v1133_v20, %v1137_v58 }
 0x248   : > { %1347 = vmatprep.subr.bf16.mxu1 %v1346_v19 }
 0x249   : > { %1349 = vmatpush1.bf16.msra.mxu1 %v1348_v16 }
 0x24a   : > { %1351 = vmatprep.subr.bf16.mxu1 %v1350_v27 }
 0x24c   : > { %1295 = vmatmul.mubr.msk.f32.vlgmr.msra.gmra.mrb[4].mxu1 %vm885_vm2, %v878_v28 }
 0x24d   : > { %1353 = vmatpush1.bf16.msra.mxu1 %v1352_v29  ;;  %1047 = vmatprep.mubr.f32.mxu1 %v1604_v1 }
 0x24e   : > { %1355 = vmatprep.subr.bf16.mxu1 %v1354_v30 }
 0x251   : > { %1357 = vmatpush1.bf16.msra.mxu1 %v1356_v11 }
 0x252   : > { %1359 = vmatprep.subr.bf16.mxu1 %v1358_v44 }
 0x255   : > { %1361 = vmatpush1.bf16.msra.mxu1 %v1360_v47 }
 0x256   : > { %1363 = vmatprep.subr.bf16.mxu1 %v1362_v50 }
 0x259   : > { %1365 = vmatpush1.bf16.msra.mxu1 %v1364_v40 }
 0x25c   : > { %1296 = vmatmul.mubr.msk.f32.vlgmr.msra.gmra.mrb[6].mxu1 %vm533_vm0, %v979_v14 }
 0x25d   : > { %1122 = vmatprep.mubr.f32.mxu1 %v1604_v1  ;;  %v1606_v1 = vmov 1966171168  }
 0x25e   : > { %v1145_v4 = vunpack.c.l.s4 %v1606_v1 }
 0x260   : > { %v1146_v59 = vunpack.c.0.s8 %v1145_v4 }
 0x262   : > { %v1149_v0 = vsub.s32 %v1146_v59, %v1136_v57 }
 0x31f   : > { %v955_v41 = vpop.f32.mrb[4].mxu1 }
 0x320   : > { %v956_v51 = vadd.f32 %v955_v41, %v883_v15  ;;  %v957_v52 = vpop.f32.mrb[5].mxu1 }
 0x321   : > { %v958_v53 = vadd.f32 %v957_v52, %v883_v15 }
 0x322   : > { %v960_v55 = vmax.f32 %v956_v51, 0.0 }
 0x323   : > { %v961_v54 = vmax.f32 %v958_v53, 0.0 }
 0x325   : > { %1058 = vmatprep.subr.mxu1 %v961_v54 }
 0x326   : > { %1059 = vmatpush1.msra.mxu1 %v960_v55 }
 0x327   : > { %1297 = vmatmul.mubr.msk.f32.vlgmr.msra.gmra.mrb[6].mxu1 %vm1054_vm3, %v978_v3 }
 0x3fa   : > { %v1124_v60 = vpop.f32.mrb[6].mxu1 }
 0x3fb   : > { %v1139_v61 = vadd.f32 %v1138_v21, %v1124_v60  ;;  %v1126_v62 = vpop.f32.mrb[7].mxu1 }
 0x3fc   : > { %v1140_v63 = vadd.f32 %v1138_v21, %v1126_v62 }
 0x3fe   : > { %v1143_v2 = vcombine.low %v1139_v61, %v1140_v63 }
 0x400   : > { %v1150_v6 = vrot.slane %v1143_v2, %v1149_v0 }
 0x402   : > { %v1157_v7 = vrot.slane %v1150_v6, %v1149_v0 }
 0x404   : > { %1163 = vst.msk [vmem:[%s473_s30] sm:$0x3] %vm1161_vm4, %v1157_v7 }
 0x405   : > { %1540 = shalt.err (!%p1537_p11)
}
 0x406   : > { %s1541_s29 = scalar_lea.hbm %s2045_s28, 32  ;;  %s1545_s23 = scalar_lea.hbm %s2133_s12, 64 }
 0x407   : > { %p1542_p0 = scmp.ne.s32.totalorder %s2045_s28, %s1541_s29  ;;  %p1546_p3 = scmp.lt.u32.totalorder %s2045_s28, %s2133_s12 }
 0x408   : > { %p1547_p5 = scmp.lt.u32.totalorder %s1545_s23, %s1541_s29  ;;  %p1549_p13 = scmp.lt.u32.totalorder %s1541_s29, %s2045_s28 }
 0x409   : > { %p1543_p4 = pnand %p1542_p0, %p2134_p2 }
 0x40a   : > { %p1548_p6 = por %p1547_p5, %p1546_p3 }
 0x40b   : > { %p1544_p1 = pneg %p1543_p4 }
 0x40c   : > { %p1550_p12 = por %p1549_p13, %p1548_p6 }
 0x40e   : > { %p1551_p10 = pnand %p1550_p12, %p1544_p1 }
 0x410   : > { %1554 = shalt.err (!%p1551_p10)
}
 0x411   : > { %1396 = dma.vmem_to_hbm [thread:$0]  (%p2134_p2), %s2047_s14, 32, %s2045_s28, %s1165_s15  }
 0x412 PF: > { %s2135_s19 = sld [smem:[#allocation12_spill]]  ;;  %s2136_s30 = sld [smem:[#allocation16_spill]] }
 0x413   : > { %p2138_p8 = scmp.ge.s32.totalorder %s1597_s26, 2 }
 0x418   : > { %s1191_s25 = sand.u32 1, %s2135_s19   ;;  %p2137_p7 = scmp.ne.s32.totalorder %s2136_s30, 0 }
 0x419   : > { %s1192_s0 = scalar_lea.sflag [#allocation5], %s1191_s25 }
 0x41a   : > { %p1406_p9 = pnand %p2138_p8, %p2137_p7 }
 0x41c   : > { %1580 = dma.done.wait (!%p1406_p9), %s1192_s0, 32  }
 0x41d   : > { %1582 = vsyncadd (!%p1406_p9), %s1192_s0, 4294967264  ;;  %s2139_s26 = sld [smem:[#allocation14_spill]]  ;;  %s2140_s18 = sld [smem:[#allocation13_spill]] }
 0x41e   : > { %s2141_s25 = sld [smem:[#allocation15_spill]]  ;;  %s2142_s23 = smov %s1589_s24 }
 0x423   : > { %p30_p11 = scmp.ge.s32.totalorder %s2139_s26, 4   ;;  %s2143_s24 = smov %s2140_s18 }
 0x425   :  { %32 = sbr.rel (!%p30_p11) target bundleno = 10 (0xa), region = 126 }
 0x42c   :  { %1197 = vsyncpa [#allocation4], 1 }
 0x42d   :  { %1199 = vsyncpa [#allocation4 + $0x1], 1 }
 0x42e   :  { %1200 = vsyncpa [#allocation7], 1 }
 0x42f   :  { %1202 = vsyncpa [#allocation7 + $0x1], 1 }
 0x430   :  { %1203 = vsyncpa [#allocation5], 1 }
 0x431   :  { %1205 = vsyncpa [#allocation5 + $0x1], 1 }

</bundles_post_ra>
